<compile_context>
chip_gen: v6e
topology: v6e:2x2x1
jax: 0.10.0
libtpu: 0.0.40
codegen_flags: <defaults>
</compile_context>

<pallas_src>
import functools

import jax
import jax.numpy as jnp
from jax import lax
from jax.experimental import pallas as pl
from jax.experimental.pallas import tpu as pltpu

_LANE = 128   # lane width (batch tile granularity)
_SUB = 8      # sublane granularity (hidden / vocab padding)


def _round_up(a, b):
    return ((a + b - 1) // b) * b


def strike_mlp_kernel(pitch_ref, vel_ref, x_ref, y_ref,
                      w1e_ref, wv_ref, wx_ref, wy_ref, b1_ref, w2_ref, b2_ref,
                      out_ref):
    """One batch tile; batch is laid out along lanes.

    pitch_ref: (1, tb)  int32   pitch-type ids
    vel/x/y:   (1, tb)  f32     scalar features
    w1e_ref:   (Hp, Vp) f32     (emb_table @ W1[:E]).T, zero padded
    wv/wx/wy:  (Hp, 1)  f32     W1 rows for velocity / x / y as columns
    b1_ref:    (Hp, 1)  f32     hidden bias column
    w2_ref:    (Hp, 1)  f32     fc2 weight column
    b2_ref:    (1, 1)   f32     fc2 bias scalar (SMEM)
    out_ref:   (1, tb)  f32     sigmoid output, batch along lanes
    """
    vp = w1e_ref.shape[1]
    tb = pitch_ref.shape[1]

    # One-hot of pitch ids; the matmul below is then an exact (rounding-free) gather
    # of the pre-folded embedding@W1 columns. Zero-padded rows/cols contribute zero.
    pitch = pitch_ref[...]                                             # (1, tb) int32
    iota_v = lax.broadcasted_iota(jnp.int32, (vp, tb), 0)
    onehot = (iota_v == pitch).astype(jnp.float32)                     # (Vp, tb)

    # fc1 (transposed): h^T = W1_emb^T @ onehot + w_vel*vel + w_x*x + w_y*y + b1
    h = jnp.dot(w1e_ref[...], onehot, preferred_element_type=jnp.float32)  # (Hp, tb)
    h = h + wv_ref[...] * vel_ref[...]
    h = h + wx_ref[...] * x_ref[...]
    h = h + wy_ref[...] * y_ref[...]
    h = jnp.maximum(h + b1_ref[...], 0.0)

    # fc2: single real output column -> broadcast-multiply + sublane reduce; sigmoid
    # is evaluated only on the one real row (EUP work = 1 row, not 128 lanes/row).
    o = jnp.sum(w2_ref[...] * h, axis=0, keepdims=True) + b2_ref[0, 0]     # (1, tb)
    out_ref[...] = jax.nn.sigmoid(o).astype(out_ref.dtype)


@functools.partial(jax.jit, static_argnames=("max_tile",))
def strike_model_forward(pitch_type, velocity, x, y, params, max_tile=8192):
    """params: embedding (V,E), w1 (E+3,H), b1 (H,), w2 (H,1), b2 (1,)."""
    emb = params["embedding"]
    w1, b1 = params["w1"], params["b1"]
    w2, b2 = params["w2"], params["b2"]

    B = pitch_type.shape[0]
    V, E = emb.shape
    H = w1.shape[1]
    Hp = _round_up(H, _SUB)
    Vp = _round_up(V, _SUB)

    # ---- fold the embedding table into fc1 (tiny, one-time transform) -----------
    # (emb @ W1[:E])[pitch] == emb[pitch] @ W1[:E]; HIGHEST precision keeps it exact-f32.
    w1_emb = jnp.dot(emb.astype(jnp.float32), w1[:E].astype(jnp.float32),
                     precision=lax.Precision.HIGHEST)                     # (V, H)
    w1e_t = jnp.zeros((Hp, Vp), jnp.float32).at[:H, :V].set(w1_emb.T)
    wv = jnp.zeros((Hp, 1), jnp.float32).at[:H, 0].set(w1[E])
    wx = jnp.zeros((Hp, 1), jnp.float32).at[:H, 0].set(w1[E + 1])
    wy = jnp.zeros((Hp, 1), jnp.float32).at[:H, 0].set(w1[E + 2])
    b1c = jnp.zeros((Hp, 1), jnp.float32).at[:H, 0].set(b1)
    w2c = jnp.zeros((Hp, 1), jnp.float32).at[:H, 0].set(w2[:, 0])
    b2s = b2.reshape(1, 1).astype(jnp.float32)

    # ---- batch tiling: lanes carry the batch ------------------------------------
    # tb multiple of 128, capped at max_tile; split so the grid has >=2 parallel
    # steps when possible (keeps both v7x TensorCores busy).
    bp_min = _round_up(max(B, 1), _LANE)
    tb = min(max_tile, bp_min)
    if tb == bp_min and bp_min >= 2 * _LANE:
        tb = _round_up(bp_min // 2, _LANE)
    bp = _round_up(bp_min, tb)
    grid = (bp // tb,)

    def to_row(a, dtype):
        a = a.astype(dtype).reshape(1, B)
        if bp == B:
            return a
        return jnp.zeros((1, bp), dtype).at[:, :B].set(a)

    pitch_row = to_row(pitch_type, jnp.int32)
    vel_row = to_row(velocity, jnp.float32)
    x_row = to_row(x, jnp.float32)
    y_row = to_row(y, jnp.float32)

    row_spec = pl.BlockSpec((1, tb), lambda i: (0, i))     # batch-tiled, lane-dense
    col_spec = pl.BlockSpec((Hp, 1), lambda i: (0, 0))     # resident weight columns

    out = pl.pallas_call(
        strike_mlp_kernel,
        out_shape=jax.ShapeDtypeStruct((1, bp), jnp.float32),
        grid=grid,
        in_specs=[
            row_spec, row_spec, row_spec, row_spec,            # pitch, vel, x, y
            pl.BlockSpec((Hp, Vp), lambda i: (0, 0)),          # folded emb@W1 (resident)
            col_spec, col_spec, col_spec,                      # wv, wx, wy
            col_spec, col_spec,                                # b1, w2
            pl.BlockSpec(memory_space=pltpu.MemorySpace.SMEM), # b2 scalar
        ],
        out_specs=row_spec,
        compiler_params=pltpu.CompilerParams(
            dimension_semantics=("parallel",)),
    )(pitch_row, vel_row, x_row, y_row, w1e_t, wv, wx, wy, b1c, w2c, b2s)

    return out[0, :B].reshape(B, 1)


def init_params(key, num_pitch_types=5, embed_dim=8, hidden_dim=8):
    k_emb, k_w1, k_b1, k_w2, k_b2 = jax.random.split(key, 5)
    in_dim = embed_dim + 3
    return {
        "embedding": jax.random.normal(k_emb, (num_pitch_types, embed_dim),
                                       dtype=jnp.float32),
        # stored as (in_features, out_features) == W.T in PyTorch convention
        "w1": jax.random.normal(k_w1, (in_dim, hidden_dim),
                                dtype=jnp.float32) * (1.0 / jnp.sqrt(in_dim)),
        "b1": jax.random.normal(k_b1, (hidden_dim,), dtype=jnp.float32) * 0.1,
        "w2": jax.random.normal(k_w2, (hidden_dim, 1),
                                dtype=jnp.float32) * (1.0 / jnp.sqrt(hidden_dim)),
        "b2": jax.random.normal(k_b2, (1,), dtype=jnp.float32) * 0.1,
    }


def reference_forward(pitch_type, velocity, x, y, params):
    pitch_embed = jnp.take(params["embedding"], pitch_type, axis=0)
    feats = jnp.concatenate(
        [pitch_embed, velocity[:, None], x[:, None], y[:, None]], axis=1)
    h = jnp.maximum(feats @ params["w1"] + params["b1"], 0.0)
    return jax.nn.sigmoid(h @ params["w2"] + params["b2"])


if __name__ == "__main__":
    key = jax.random.PRNGKey(0)
    k_params = jax.random.fold_in(key, 12345)

    NUM_PITCH_TYPES = 5
    EMBED_DIM = 8
    HIDDEN_DIM = 8
    params = init_params(k_params, NUM_PITCH_TYPES, EMBED_DIM, HIDDEN_DIM)

    # B=8: single-tile path; B=300: multi-step grid + padded tail tile.
    for B in (8, 300):
        kb = jax.random.fold_in(key, B)
        k_pt, k_vel, k_x, k_y = jax.random.split(kb, 4)
        pitch_type = jax.random.randint(k_pt, (B,), 0, NUM_PITCH_TYPES, dtype=jnp.int32)
        velocity = jax.random.uniform(k_vel, (B,), dtype=jnp.float32) * 10.0 + 85.0
        x = jax.random.normal(k_x, (B,), dtype=jnp.float32)
        y = jax.random.normal(k_y, (B,), dtype=jnp.float32)

        out = jax.block_until_ready(
            strike_model_forward(pitch_type, velocity, x, y, params))
        ref = reference_forward(pitch_type, velocity, x, y, params)
        assert out.shape == (B, 1), out.shape
        assert jnp.allclose(out, ref, atol=2e-5, rtol=2e-5), (
            "max abs diff", float(jnp.max(jnp.abs(out - ref))))

    print("KERNEL_OK")
</pallas_src>

<mosaic_0001>
module attributes {stable_mosaic.version = 11 : i64} {
  func.func @strike_mlp_kernel(%arg0: i32, %arg1: memref<1x128xi32, #tpu.memory_space<vmem>>, %arg2: memref<1x128xf32, #tpu.memory_space<vmem>>, %arg3: memref<1x128xf32, #tpu.memory_space<vmem>>, %arg4: memref<1x128xf32, #tpu.memory_space<vmem>>, %arg5: memref<8x8xf32, #tpu.memory_space<vmem>>, %arg6: memref<8x1xf32, #tpu.memory_space<vmem>>, %arg7: memref<8x1xf32, #tpu.memory_space<vmem>>, %arg8: memref<8x1xf32, #tpu.memory_space<vmem>>, %arg9: memref<8x1xf32, #tpu.memory_space<vmem>>, %arg10: memref<8x1xf32, #tpu.memory_space<vmem>>, %arg11: memref<1x1xf32, #tpu.memory_space<smem>>, %arg12: memref<1x128xf32, #tpu.memory_space<vmem>>) attributes {dimension_semantics = [#tpu.dimension_semantics<parallel>], iteration_bounds = array<i64: 1>, scalar_prefetch = 0 : i64, scratch_operands = 0 : i64, tpu.core_type = #tpu.core_type<tc>, window_params = [{transform_indices = @transform_0, window_bounds = array<i64: 1, 128>}, {transform_indices = @transform_1, window_bounds = array<i64: 1, 128>}, {transform_indices = @transform_2, window_bounds = array<i64: 1, 128>}, {transform_indices = @transform_3, window_bounds = array<i64: 1, 128>}, {pipeline_mode = #tpu.pipeline_mode<synchronous>, transform_indices = @transform_4, window_bounds = array<i64: 8, 8>}, {pipeline_mode = #tpu.pipeline_mode<synchronous>, transform_indices = @transform_5, window_bounds = array<i64: 8, 1>}, {pipeline_mode = #tpu.pipeline_mode<synchronous>, transform_indices = @transform_6, window_bounds = array<i64: 8, 1>}, {pipeline_mode = #tpu.pipeline_mode<synchronous>, transform_indices = @transform_7, window_bounds = array<i64: 8, 1>}, {pipeline_mode = #tpu.pipeline_mode<synchronous>, transform_indices = @transform_8, window_bounds = array<i64: 8, 1>}, {pipeline_mode = #tpu.pipeline_mode<synchronous>, transform_indices = @transform_9, window_bounds = array<i64: 8, 1>}, {transform_indices = @transform_10, window_bounds = array<i64: 1, 1>}, {transform_indices = @transform_11, window_bounds = array<i64: 1, 128>}]} {
    %c0 = arith.constant 0 : index
    %c0_0 = arith.constant 0 : index
    %0 = vector.load %arg1[%c0, %c0_0] : memref<1x128xi32, #tpu.memory_space<vmem>>, vector<1x128xi32>
    %1 = tpu.iota {dimensions = array<i32: 0>} : vector<8x128xi32>
    %2 = vector.broadcast %0 : vector<1x128xi32> to vector<8x128xi32>
    %3 = arith.cmpi eq, %1, %2 : vector<8x128xi32>
    %4 = arith.extui %3 : vector<8x128xi1> to vector<8x128xi32>
    %5 = arith.sitofp %4 : vector<8x128xi32> to vector<8x128xf32>
    %c0_1 = arith.constant 0 : index
    %c0_2 = arith.constant 0 : index
    %6 = vector.load %arg5[%c0_1, %c0_2] : memref<8x8xf32, #tpu.memory_space<vmem>>, vector<8x8xf32>
    %cst = arith.constant dense<0.000000e+00> : vector<8x128xf32>
    %7 = tpu.matmul %6, %5, %cst {dimension_numbers = #tpu.dot_dimension_numbers<[1], [0], [0], [1], [0, 0, 1, 1], [], []>} : vector<8x8xf32>, vector<8x128xf32>, vector<8x128xf32> -> vector<8x128xf32>
    %c0_3 = arith.constant 0 : index
    %c0_4 = arith.constant 0 : index
    %8 = vector.load %arg6[%c0_3, %c0_4] : memref<8x1xf32, #tpu.memory_space<vmem>>, vector<8x1xf32>
    %c0_5 = arith.constant 0 : index
    %c0_6 = arith.constant 0 : index
    %9 = vector.load %arg2[%c0_5, %c0_6] : memref<1x128xf32, #tpu.memory_space<vmem>>, vector<1x128xf32>
    %10 = vector.broadcast %8 : vector<8x1xf32> to vector<8x128xf32>
    %11 = vector.broadcast %9 : vector<1x128xf32> to vector<8x128xf32>
    %12 = arith.mulf %10, %11 : vector<8x128xf32>
    %13 = arith.addf %7, %12 : vector<8x128xf32>
    %c0_7 = arith.constant 0 : index
    %c0_8 = arith.constant 0 : index
    %14 = vector.load %arg7[%c0_7, %c0_8] : memref<8x1xf32, #tpu.memory_space<vmem>>, vector<8x1xf32>
    %c0_9 = arith.constant 0 : index
    %c0_10 = arith.constant 0 : index
    %15 = vector.load %arg3[%c0_9, %c0_10] : memref<1x128xf32, #tpu.memory_space<vmem>>, vector<1x128xf32>
    %16 = vector.broadcast %14 : vector<8x1xf32> to vector<8x128xf32>
    %17 = vector.broadcast %15 : vector<1x128xf32> to vector<8x128xf32>
    %18 = arith.mulf %16, %17 : vector<8x128xf32>
    %19 = arith.addf %13, %18 : vector<8x128xf32>
    %c0_11 = arith.constant 0 : index
    %c0_12 = arith.constant 0 : index
    %20 = vector.load %arg8[%c0_11, %c0_12] : memref<8x1xf32, #tpu.memory_space<vmem>>, vector<8x1xf32>
    %c0_13 = arith.constant 0 : index
    %c0_14 = arith.constant 0 : index
    %21 = vector.load %arg4[%c0_13, %c0_14] : memref<1x128xf32, #tpu.memory_space<vmem>>, vector<1x128xf32>
    %22 = vector.broadcast %20 : vector<8x1xf32> to vector<8x128xf32>
    %23 = vector.broadcast %21 : vector<1x128xf32> to vector<8x128xf32>
    %24 = arith.mulf %22, %23 : vector<8x128xf32>
    %25 = arith.addf %19, %24 : vector<8x128xf32>
    %c0_15 = arith.constant 0 : index
    %c0_16 = arith.constant 0 : index
    %26 = vector.load %arg9[%c0_15, %c0_16] : memref<8x1xf32, #tpu.memory_space<vmem>>, vector<8x1xf32>
    %27 = vector.broadcast %26 : vector<8x1xf32> to vector<8x128xf32>
    %28 = arith.addf %25, %27 : vector<8x128xf32>
    %cst_17 = arith.constant 0.000000e+00 : f32
    %29 = vector.broadcast %cst_17 : f32 to vector<8x128xf32>
    %30 = arith.maximumf %28, %29 : vector<8x128xf32>
    %c0_18 = arith.constant 0 : index
    %c0_19 = arith.constant 0 : index
    %31 = vector.load %arg10[%c0_18, %c0_19] : memref<8x1xf32, #tpu.memory_space<vmem>>, vector<8x1xf32>
    %32 = vector.broadcast %31 : vector<8x1xf32> to vector<8x128xf32>
    %33 = arith.mulf %32, %30 : vector<8x128xf32>
    %cst_20 = arith.constant dense<0.000000e+00> : vector<128xf32>
    %34 = vector.multi_reduction <add>, %33, %cst_20 [0] : vector<8x128xf32> to vector<128xf32>
    %35 = vector.shape_cast %34 : vector<128xf32> to vector<1x128xf32>
    %c0_21 = arith.constant 0 : index
    %c0_22 = arith.constant 0 : index
    %36 = memref.load %arg11[%c0_21, %c0_22] : memref<1x1xf32, #tpu.memory_space<smem>>
    %37 = vector.broadcast %36 : f32 to vector<1x128xf32>
    %38 = arith.addf %35, %37 : vector<1x128xf32>
    %39 = arith.negf %38 : vector<1x128xf32>
    %40 = math.exp %39 : vector<1x128xf32>
    %cst_23 = arith.constant 1.000000e+00 : f32
    %41 = vector.broadcast %cst_23 : f32 to vector<1x128xf32>
    %42 = arith.addf %41, %40 : vector<1x128xf32>
    %43 = arith.divf %41, %42 : vector<1x128xf32>
    %c0_24 = arith.constant 0 : index
    %c0_25 = arith.constant 0 : index
    %44 = vector.load %arg12[%c0_24, %c0_25] : memref<1x128xf32, #tpu.memory_space<vmem>>, vector<1x128xf32>
    tpu.vector_store %arg12[%c0_24, %c0_25], %43 {strides = array<i32>} : memref<1x128xf32, #tpu.memory_space<vmem>>, vector<1x128xf32>,
    return
  }
  func.func @transform_0(%arg0: i32) -> (i32, i32) {
    %c0_i32 = arith.constant 0 : i32
    %c0_i32_0 = arith.constant 0 : i32
    return %c0_i32, %arg0 : i32, i32
  }
  func.func @transform_1(%arg0: i32) -> (i32, i32) {
    %c0_i32 = arith.constant 0 : i32
    %c0_i32_0 = arith.constant 0 : i32
    return %c0_i32, %arg0 : i32, i32
  }
  func.func @transform_2(%arg0: i32) -> (i32, i32) {
    %c0_i32 = arith.constant 0 : i32
    %c0_i32_0 = arith.constant 0 : i32
    return %c0_i32, %arg0 : i32, i32
  }
  func.func @transform_3(%arg0: i32) -> (i32, i32) {
    %c0_i32 = arith.constant 0 : i32
    %c0_i32_0 = arith.constant 0 : i32
    return %c0_i32, %arg0 : i32, i32
  }
  func.func @transform_4(%arg0: i32) -> (i32, i32) {
    %c0_i32 = arith.constant 0 : i32
    %c0_i32_0 = arith.constant 0 : i32
    %c0_i32_1 = arith.constant 0 : i32
    return %c0_i32, %c0_i32_0 : i32, i32
  }
  func.func @transform_5(%arg0: i32) -> (i32, i32) {
    %c0_i32 = arith.constant 0 : i32
    %c0_i32_0 = arith.constant 0 : i32
    %c0_i32_1 = arith.constant 0 : i32
    return %c0_i32, %c0_i32_0 : i32, i32
  }
  func.func @transform_6(%arg0: i32) -> (i32, i32) {
    %c0_i32 = arith.constant 0 : i32
    %c0_i32_0 = arith.constant 0 : i32
    %c0_i32_1 = arith.constant 0 : i32
    return %c0_i32, %c0_i32_0 : i32, i32
  }
  func.func @transform_7(%arg0: i32) -> (i32, i32) {
    %c0_i32 = arith.constant 0 : i32
    %c0_i32_0 = arith.constant 0 : i32
    %c0_i32_1 = arith.constant 0 : i32
    return %c0_i32, %c0_i32_0 : i32, i32
  }
  func.func @transform_8(%arg0: i32) -> (i32, i32) {
    %c0_i32 = arith.constant 0 : i32
    %c0_i32_0 = arith.constant 0 : i32
    %c0_i32_1 = arith.constant 0 : i32
    return %c0_i32, %c0_i32_0 : i32, i32
  }
  func.func @transform_9(%arg0: i32) -> (i32, i32) {
    %c0_i32 = arith.constant 0 : i32
    %c0_i32_0 = arith.constant 0 : i32
    %c0_i32_1 = arith.constant 0 : i32
    return %c0_i32, %c0_i32_0 : i32, i32
  }
  func.func @transform_10(%arg0: i32) -> (i32, i32) {
    %c0_i32 = arith.constant 0 : i32
    %c0_i32_0 = arith.constant 0 : i32
    %c0_i32_1 = arith.constant 0 : i32
    return %c0_i32, %c0_i32_0 : i32, i32
  }
  func.func @transform_11(%arg0: i32) -> (i32, i32) {
    %c0_i32 = arith.constant 0 : i32
    %c0_i32_0 = arith.constant 0 : i32
    return %c0_i32, %arg0 : i32, i32
  }
}

</mosaic_0001>

<bundles_post_ra>
// kernel: strike_model_forward.1
= control target key start
LH: loop header
LB: loop body
LE: loop exit
PB: predicated region body
PF: predicated region fallthrough
CT: control target
= control target key end

     0   :  { %v40_v0 = vlaneseq  ;;  %v228_v1 = vmov 0.0   ;;  %vm229_vm0 = vmmov 0   ;;  %v230_v5 = vmov 0   ;;  %s328_s0 = inlined_call_operand.vmem [shape: s32[1,128], index: 0, kind: input, shape index: {}]   ;;  %s329_s4 = inlined_call_operand.vmem [shape: f32[8,8], index: 4, kind: input, shape index: {}]   ;;  %s330_s5 = inlined_call_operand.vmem [shape: f32[8,1], index: 5, kind: input, shape index: {}]   ;;  %s331_s7 = inlined_call_operand.vmem [shape: f32[8,1], index: 7, kind: input, shape index: {}]   ;;  %s332_s6 = inlined_call_operand.vmem [shape: f32[8,1], index: 6, kind: input, shape index: {}]   ;;  %s333_s8 = inlined_call_operand.vmem [shape: f32[8,1], index: 8, kind: input, shape index: {}]   ;;  %s334_s9 = inlined_call_operand.vmem [shape: f32[8,1], index: 9, kind: input, shape index: {}]   ;;  %s335_s1 = inlined_call_operand.vmem [shape: f32[1,128], index: 1, kind: input, shape index: {}]   ;;  %s336_s2 = inlined_call_operand.vmem [shape: f32[1,128], index: 2, kind: input, shape index: {}]   ;;  %s337_s3 = inlined_call_operand.vmem [shape: f32[1,128], index: 3, kind: input, shape index: {}]   ;;  %s338_s10 = inlined_call_operand.<no memory space> [shape: f32[1,1], index: 10, kind: input, shape index: {}]   ;;  %s339_s11 = inlined_call_operand.vmem [shape: f32[1,128], index: 11, kind: output, shape index: {}]  }
   0x1   :  { %213 = vmatprep.subr.mxu0 %v228_v1  ;;  %v203_v2 = vld [vmem:[%s328_s0] ss:$0 sm:$0xff]  ;;  %215 = vmatprep.mubr.msk.f32.mxu0 %vm229_vm0, %v228_v1  ;;  %vm64_vm1 = vcmask 64512   ;;  %v231_v10 = vmov 1.0   ;;  %v190_v36 = vstv %s338_s10 }
   0x2   :  { %v50_v3 = vld [vmem:[%s330_s5] sm:$0xff]  ;;  %v41_v4 = vshrl.u32 %v40_v0, 7  ;;  %222 = vset.pattern.permute.xlu0 %v230_v5  ;;  %223 = vset.pattern.permute.xlu1 %v230_v5 }
   0x3   :  { %v153_v6 = vld [vmem:[%s331_s7] sm:$0xff]  ;;  %54 = vperm.xlu0 %222, %v50_v3  }
   0x4   :  { %v49_v7 = vld [vmem:[%s329_s4] sm:$0xff]  ;;  %157 = vperm.xlu1 %223, %v153_v6   ;;  %vm46_vm2 = vcmp.eq.s32.totalorder %v41_v4, %v203_v2 }
   0x5   :  { %v138_v8 = vld [vmem:[%s332_s6] sm:$0xff]  ;;  %214 = vmatpush3.msk.msra.mxu0 %vm46_vm2, %v231_v10 }
   0x6   :  { %v168_v9 = vld [vmem:[%s333_s8] sm:$0xff]  ;;  %216 = vmatmul.mubr.msk.f32.vlgmr.msra.gmra.mxu0 %vm64_vm1, %v49_v7 }
   0x7   :  { %142 = vperm.xlu0 %222, %v138_v8   ;;  %v176_v11 = vld [vmem:[%s334_s9] sm:$0xff] }
   0x8   :  { %171 = vperm.xlu1 %223, %v168_v9   ;;  %v205_v13 = vld [vmem:[%s335_s1] ss:$0 sm:$0xff] }
   0x9   :  { %v208_v14 = vld [vmem:[%s336_s2] ss:$0 sm:$0xff] }
   0xa   :  { %v209_v15 = vld [vmem:[%s337_s3] ss:$0 sm:$0xff] }
   0xb   :  { %179 = vperm.xlu0 %222, %v176_v11  }
  0x7e   :  { %v55_v12 = vpop.permute.xlu0 %54 }
  0x7f   :  { %v63_v16 = vmul.f32 %v205_v13, %v55_v12  ;;  %v158_v17 = vpop.permute.xlu1 %157 }
  0x80   :  { %v166_v21 = vmul.f32 %v209_v15, %v158_v17 }
  0x82   :  { %v143_v18 = vpop.permute.xlu0 %142 }
  0x83   :  { %v151_v20 = vmul.f32 %v208_v14, %v143_v18  ;;  %v172_v26 = vpop.permute.xlu1 %171 }
  0x86   :  { %v180_v29 = vpop.permute.xlu0 %179 }
  0xc6   :  { %v134_v19 = vpop.f32.mrf.mxu0 }
  0xc7   :  { %v135_v22 = vadd.f32 %v134_v19, %v63_v16 }
  0xc8   :  { %v217_v23 = vpop.f32.mrf.mxu0 }
  0xc9   :  { %v152_v24 = vadd.f32 %v151_v20, %v135_v22 }
  0xcb   :  { %v167_v25 = vadd.f32 %v166_v21, %v152_v24 }
  0xcd   :  { %v174_v27 = vadd.f32 %v172_v26, %v167_v25 }
  0xcf   :  { %v175_v28 = vmax.f32 %v174_v27, 0.0 }
  0xd1   :  { %v182_v30 = vmul.f32 %v180_v29, %v175_v28 }
  0xd3   :  { %v183_v31 = vrot.slane %v182_v30, 4 }
  0xd5   :  { %v184_v32 = vadd.f32 %v183_v31, %v182_v30 }
  0xd7   :  { %v185_v33 = vrot.slane %v184_v32, 2 }
  0xd9   :  { %v186_v34 = vadd.f32 %v185_v33, %v184_v32 }
  0xdb   :  { %v187_v35 = vrot.slane %v186_v34, 1 }
  0xdd   :  { %v188_v37 = vadd.f32 %v187_v35, %v186_v34 }
  0xdf   :  { %v191_v38 = vadd.f32 %v190_v36, %v188_v37 }
  0xe1   :  { %v210_v39 = vmul.f32 -1.442695, %v191_v38 }
  0xe3   :  { %224 = vpow2.f32 %v210_v39 }
  0xf0   :  { %v225_v40 = vpop.eup %224 }
  0xf1   :  { %v195_v41 = vadd.f32 1.0, %v225_v40 }
  0xf3   :  { %226 = vrcp.f32 %v195_v41 }
 0x100   :  { %v227_v42 = vpop.eup %226 }
 0x101   :  { %198 = vst [vmem:[%s339_s11] sm:$0x1] %v227_v42 }

</bundles_post_ra>
